<compile_context>
chip_gen: v7x
topology: tpu7x:2x2x1
jax: 0.10.0
libtpu: 0.0.40
codegen_flags: <defaults>
</compile_context>

<pallas_src>
import functools
import math

import jax
import jax.numpy as jnp
from jax.experimental import pallas as pl
from jax.experimental.pallas import tpu as pltpu


def _conv1d_kernel(x_ref, w_ref, b_ref, o_ref, xp_ref, acc_ref, *,
                   bb, l_in, l_out, k_size, pad, pack):
    """One grid step: 'same'-padded conv over `bb` batch rows.

    x_ref  : (bb, l_in, C_in)                input rows, channels-last
    w_ref  : (K, C_in, C_out)                weight (resident across steps)
    b_ref  : (1, C_out) f32                  bias   (resident across steps)
    o_ref  : (bb, l_out//pack, pack*C_out)   lane-dense packed output block
    xp_ref : (bb, l_in + 2*pad, C_in)        VMEM scratch: zero-padded slab
    acc_ref: (l_out, C_out) f32              VMEM scratch: per-row accumulator
    """
    c_in = x_ref.shape[-1]
    c_out = b_ref.shape[-1]
    n_rows = l_out // pack

    # --- zero-padded slab: three whole-block stores, no per-row Python loop ---
    if pad > 0:
        halo = jnp.zeros((bb, pad, c_in), x_ref.dtype)
        xp_ref[:, :pad, :] = halo
        xp_ref[:, pad + l_in:, :] = halo
    xp_ref[:, pad:pad + l_in, :] = x_ref[...]

    bias = b_ref[...].astype(jnp.float32)                      # (1, C_out)

    for bi in range(bb):                                        # bb kept small (<=32)
        # K accumulated matmuls (no im2col / concatenate); f32 accumulation.
        acc = jnp.zeros((l_out, c_out), jnp.float32)
        for k in range(k_size):
            tap = xp_ref[bi, k:k + l_out, :]                    # (l_out, C_in)
            acc = acc + jnp.dot(tap, w_ref[k],
                                preferred_element_type=jnp.float32,
                                precision=jax.lax.Precision.HIGHEST)
        acc = acc + bias                                        # bias once, in f32

        if pack == 1:
            # C_out already a multiple of 128 (or not evenly packable).
            o_ref[bi] = acc.astype(o_ref.dtype)
        else:
            # Pack `pack` consecutive time steps per output row so the stored
            # block is 128-lane dense and its HBM DMA is unmasked / unpadded.
            acc_ref[...] = acc
            for p in range(pack):
                o_ref[bi, :, p * c_out:(p + 1) * c_out] = (
                    acc_ref[pl.ds(p, n_rows, stride=pack), :].astype(o_ref.dtype))


def _round_up(x, m):
    return -(-x // m) * m


def _vmem_block_bytes(shape, dtype):
    """(8,128)-tile-padded VMEM footprint of one buffer of `shape`/`dtype`."""
    itemsize = jnp.dtype(dtype).itemsize
    if len(shape) < 2:
        n = shape[0] if shape else 1
        return _round_up(max(n, 1) * itemsize, 512)
    lead = 1
    for d in shape[:-2]:
        lead *= d
    sublane = 8 * max(1, 4 // itemsize)        # sub-32-bit dtypes pack sublanes
    return lead * _round_up(shape[-2], sublane) * _round_up(shape[-1], 128) * itemsize


def _vmem_budget_and_limit():
    """Generation-aware working budget and scoped-VMEM limit to request."""
    try:
        cap = int(pltpu.get_tpu_info().vmem_capacity_bytes)   # 128 MiB v5e/v6e, 64 MiB v7x
    except Exception:
        cap = 64 << 20                                        # conservative fallback
    return cap // 4, min(cap // 2, 64 << 20)


def _pick_batch_block(B, l_in, l_pad, l_out, n_rows, c_in, c_out, k_size, pack,
                      dtype, budget_bytes):
    """Largest batch-block bb (divisor of B, <= 32) whose (8,128)-padded VMEM
    footprint (double-buffered in/out + scratch + resident weight/bias) fits
    the budget while keeping at least min(4, B) grid steps (>= 2 per v7x
    TensorCore when the batch allows it, and DMA/compute overlap everywhere)."""
    def footprint(bb):
        return (2 * _vmem_block_bytes((bb, l_in, c_in), dtype)              # x (dbl buf)
                + _vmem_block_bytes((bb, l_pad, c_in), dtype)               # padded slab
                + _vmem_block_bytes((l_out, c_out), jnp.float32)            # f32 acc
                + 2 * _vmem_block_bytes((bb, n_rows, pack * c_out), dtype)  # out (dbl buf)
                + _vmem_block_bytes((k_size, c_in, c_out), dtype)           # weight
                + _vmem_block_bytes((1, c_out), jnp.float32))               # bias

    min_steps = min(4, B)
    cands = [bb for bb in range(1, B + 1)
             if B % bb == 0 and bb <= 32
             and B // bb >= min_steps and footprint(bb) <= budget_bytes]
    return max(cands) if cands else 1


def my_conv1d(x, weight, bias, *, compute_dtype=None):
    """x: (B, L, C_in); weight: (C_out, C_in, K) [torch layout]; bias: (C_out,).

    compute_dtype=jnp.bfloat16 halves HBM/VMEM traffic on v6e/v7x (accumulation
    and bias add stay f32); default keeps the PyTorch module's f32 numerics.
    """
    B, L, C_in = x.shape
    C_out, C_in_w, K = weight.shape
    assert C_in_w == C_in
    pad = K // 2
    L_out = L + 2 * pad - K + 1          # == L for odd K (torch Conv1d semantics)
    L_pad = L + 2 * pad

    cdtype = jnp.dtype(compute_dtype) if compute_dtype is not None else x.dtype
    out_dtype = x.dtype

    # Lane-dense packing factor: smallest pack with pack*C_out % 128 == 0.
    pack = 128 // math.gcd(C_out, 128)
    if pack > 1 and L_out % pack != 0:
        pack = 1                         # fall back to an unpacked output block
    n_rows = L_out // pack

    w = jnp.transpose(weight, (2, 1, 0)).astype(cdtype)        # (K, C_in, C_out)
    b2 = bias.reshape(1, C_out).astype(jnp.float32)
    xk = x.astype(cdtype)

    budget, vmem_limit = _vmem_budget_and_limit()
    bb = _pick_batch_block(B, L, L_pad, L_out, n_rows, C_in, C_out, K, pack,
                           cdtype, budget)
    grid = (B // bb,)

    kernel = functools.partial(
        _conv1d_kernel, bb=bb, l_in=L, l_out=L_out, k_size=K, pad=pad, pack=pack)

    itemsize = jnp.dtype(cdtype).itemsize
    cost = pl.CostEstimate(
        flops=int(2 * B * L_out * K * C_in * C_out),
        transcendentals=0,
        bytes_accessed=int(itemsize * (x.size + w.size) + 4 * bias.size
                           + jnp.dtype(out_dtype).itemsize * B * L_out * C_out),
    )

    out = pl.pallas_call(
        kernel,
        out_shape=jax.ShapeDtypeStruct((B, n_rows, pack * C_out), out_dtype),
        grid_spec=pltpu.PrefetchScalarGridSpec(
            num_scalar_prefetch=0,
            grid=grid,
            in_specs=[
                pl.BlockSpec((bb, L, C_in), lambda i: (i, 0, 0)),       # x rows
                pl.BlockSpec((K, C_in, C_out), lambda i: (0, 0, 0)),    # weight (resident)
                pl.BlockSpec((1, C_out), lambda i: (0, 0)),             # bias (resident)
            ],
            out_specs=pl.BlockSpec((bb, n_rows, pack * C_out), lambda i: (i, 0, 0)),
            scratch_shapes=[
                pltpu.VMEM((bb, L_pad, C_in), cdtype),                  # padded slab
                pltpu.VMEM((L_out, C_out), jnp.float32),                # f32 accumulator
            ],
        ),
        compiler_params=pltpu.CompilerParams(
            dimension_semantics=("parallel",),
            vmem_limit_bytes=int(vmem_limit),
        ),
        cost_estimate=cost,
    )(xk, w, b2)

    # (B, L_out/pack, pack*C_out) -> (B, L_out, C_out): identical row-major
    # element order, so this is a free metadata reshape (no extra HBM pass).
    return out.reshape(B, L_out, C_out)


def _reference_conv1d(x, weight, bias):
    # Pure-JAX reference matching torch.nn.Conv1d(padding=K//2) on (B, L, C) input.
    w = jnp.transpose(weight, (2, 1, 0))  # (K, C_in, C_out)
    out = jax.lax.conv_general_dilated(
        x, w,
        window_strides=(1,),
        padding=[(weight.shape[2] // 2, weight.shape[2] // 2)],
        dimension_numbers=("NWC", "WIO", "NWC"),
        precision=jax.lax.Precision.HIGHEST,
    )
    return out + bias[None, None, :]


if __name__ == "__main__":
    # Module config: input_size=4, hidden_size=32, kernel=3
    input_size, hidden_size, kernel_size = 4, 32, 3
    B, L = 2, 8

    key = jax.random.PRNGKey(0)
    kx, kw, kb = jax.random.split(key, 3)

    # Deterministic parameter init (uniform, scaled like torch's default fan-in init)
    fan_in = input_size * kernel_size
    bound = 1.0 / math.sqrt(fan_in)
    weight = jax.random.uniform(
        kw, (hidden_size, input_size, kernel_size), jnp.float32, -bound, bound)
    bias = jax.random.uniform(kb, (hidden_size,), jnp.float32, -bound, bound)

    # x in the module's external layout: (batch, seq, input_size)
    x = jax.random.normal(kx, (B, L, input_size), jnp.float32)

    out = my_conv1d(x, weight, bias)
    out = jax.block_until_ready(out)

    ref = _reference_conv1d(x, weight, bias)
    assert out.shape == (B, L, hidden_size), out.shape
    assert jnp.allclose(out, ref, atol=1e-5, rtol=1e-5), "mismatch vs reference"

    print("KERNEL_OK")
</pallas_src>

<mosaic_0001>
module attributes {stable_mosaic.version = 11 : i64} {
  func.func @_conv1d_kernel(%arg0: i32, %arg1: memref<1x8x4xf32, #tpu.memory_space<vmem>>, %arg2: memref<3x4x32xf32, #tpu.memory_space<vmem>>, %arg3: memref<1x32xf32, #tpu.memory_space<vmem>>, %arg4: memref<1x2x128xf32, #tpu.memory_space<vmem>>, %arg5: memref<1x10x4xf32, #tpu.memory_space<vmem>>, %arg6: memref<8x32xf32, #tpu.memory_space<vmem>>) attributes {dimension_semantics = [#tpu.dimension_semantics<parallel>], iteration_bounds = array<i64: 2>, scalar_prefetch = 0 : i64, scratch_operands = 2 : i64, tpu.core_type = #tpu.core_type<tc>, window_params = [{transform_indices = @transform_0, window_bounds = array<i64: 1, 8, 4>}, {pipeline_mode = #tpu.pipeline_mode<synchronous>, transform_indices = @transform_1, window_bounds = array<i64: 3, 4, 32>}, {pipeline_mode = #tpu.pipeline_mode<synchronous>, transform_indices = @transform_2, window_bounds = array<i64: 1, 32>}, {transform_indices = @transform_3, window_bounds = array<i64: 1, 2, 128>}]} {
    %cst = arith.constant 0.000000e+00 : f32
    %0 = vector.broadcast %cst : f32 to vector<1x1x4xf32>
    %c0 = arith.constant 0 : index
    %c0_0 = arith.constant 0 : index
    %c0_1 = arith.constant 0 : index
    %1 = vector.load %arg5[%c0, %c0_0, %c0_1] : memref<1x10x4xf32, #tpu.memory_space<vmem>>, vector<1x1x4xf32>
    tpu.vector_store %arg5[%c0, %c0_0, %c0_1], %0 {strides = array<i32>} : memref<1x10x4xf32, #tpu.memory_space<vmem>>, vector<1x1x4xf32>,
    %c0_2 = arith.constant 0 : index
    %c9 = arith.constant 9 : index
    %c0_3 = arith.constant 0 : index
    %2 = vector.load %arg5[%c0_2, %c9, %c0_3] : memref<1x10x4xf32, #tpu.memory_space<vmem>>, vector<1x1x4xf32>
    tpu.vector_store %arg5[%c0_2, %c9, %c0_3], %0 {strides = array<i32>} : memref<1x10x4xf32, #tpu.memory_space<vmem>>, vector<1x1x4xf32>,
    %c0_4 = arith.constant 0 : index
    %c0_5 = arith.constant 0 : index
    %c0_6 = arith.constant 0 : index
    %3 = vector.load %arg1[%c0_4, %c0_5, %c0_6] : memref<1x8x4xf32, #tpu.memory_space<vmem>>, vector<1x8x4xf32>
    %c0_7 = arith.constant 0 : index
    %c1 = arith.constant 1 : index
    %c0_8 = arith.constant 0 : index
    %4 = vector.load %arg5[%c0_7, %c1, %c0_8] : memref<1x10x4xf32, #tpu.memory_space<vmem>>, vector<1x8x4xf32>
    tpu.vector_store %arg5[%c0_7, %c1, %c0_8], %3 {strides = array<i32>} : memref<1x10x4xf32, #tpu.memory_space<vmem>>, vector<1x8x4xf32>,
    %c0_9 = arith.constant 0 : index
    %c0_10 = arith.constant 0 : index
    %5 = vector.load %arg3[%c0_9, %c0_10] : memref<1x32xf32, #tpu.memory_space<vmem>>, vector<1x32xf32>
    %cst_11 = arith.constant 0.000000e+00 : f32
    %6 = vector.broadcast %cst_11 : f32 to vector<8x32xf32>
    %c0_12 = arith.constant 0 : index
    %c0_13 = arith.constant 0 : index
    %c0_14 = arith.constant 0 : index
    %7 = vector.load %arg5[%c0_12, %c0_13, %c0_14] : memref<1x10x4xf32, #tpu.memory_space<vmem>>, vector<1x8x4xf32>
    %8 = vector.shape_cast %7 : vector<1x8x4xf32> to vector<8x4xf32>
    %c0_15 = arith.constant 0 : index
    %c0_16 = arith.constant 0 : index
    %c0_17 = arith.constant 0 : index
    %9 = vector.load %arg2[%c0_15, %c0_16, %c0_17] : memref<3x4x32xf32, #tpu.memory_space<vmem>>, vector<1x4x32xf32>
    %10 = vector.shape_cast %9 : vector<1x4x32xf32> to vector<4x32xf32>
    %cst_18 = arith.constant dense<0.000000e+00> : vector<8x32xf32>
    %11 = tpu.matmul %8, %10, %cst_18 {dimension_numbers = #tpu.dot_dimension_numbers<[1], [0], [0], [1], [0, 0, 1, 1], [], []>, precision = #tpu.contract_precision<fp32>} : vector<8x4xf32>, vector<4x32xf32>, vector<8x32xf32> -> vector<8x32xf32>
    %12 = arith.addf %6, %11 : vector<8x32xf32>
    %c0_19 = arith.constant 0 : index
    %c1_20 = arith.constant 1 : index
    %c0_21 = arith.constant 0 : index
    %13 = vector.load %arg5[%c0_19, %c1_20, %c0_21] : memref<1x10x4xf32, #tpu.memory_space<vmem>>, vector<1x8x4xf32>
    %14 = vector.shape_cast %13 : vector<1x8x4xf32> to vector<8x4xf32>
    %c1_22 = arith.constant 1 : index
    %c0_23 = arith.constant 0 : index
    %c0_24 = arith.constant 0 : index
    %15 = vector.load %arg2[%c1_22, %c0_23, %c0_24] : memref<3x4x32xf32, #tpu.memory_space<vmem>>, vector<1x4x32xf32>
    %16 = vector.shape_cast %15 : vector<1x4x32xf32> to vector<4x32xf32>
    %cst_25 = arith.constant dense<0.000000e+00> : vector<8x32xf32>
    %17 = tpu.matmul %14, %16, %cst_25 {dimension_numbers = #tpu.dot_dimension_numbers<[1], [0], [0], [1], [0, 0, 1, 1], [], []>, precision = #tpu.contract_precision<fp32>} : vector<8x4xf32>, vector<4x32xf32>, vector<8x32xf32> -> vector<8x32xf32>
    %18 = arith.addf %12, %17 : vector<8x32xf32>
    %c0_26 = arith.constant 0 : index
    %c2 = arith.constant 2 : index
    %c0_27 = arith.constant 0 : index
    %19 = vector.load %arg5[%c0_26, %c2, %c0_27] : memref<1x10x4xf32, #tpu.memory_space<vmem>>, vector<1x8x4xf32>
    %20 = vector.shape_cast %19 : vector<1x8x4xf32> to vector<8x4xf32>
    %c2_28 = arith.constant 2 : index
    %c0_29 = arith.constant 0 : index
    %c0_30 = arith.constant 0 : index
    %21 = vector.load %arg2[%c2_28, %c0_29, %c0_30] : memref<3x4x32xf32, #tpu.memory_space<vmem>>, vector<1x4x32xf32>
    %22 = vector.shape_cast %21 : vector<1x4x32xf32> to vector<4x32xf32>
    %cst_31 = arith.constant dense<0.000000e+00> : vector<8x32xf32>
    %23 = tpu.matmul %20, %22, %cst_31 {dimension_numbers = #tpu.dot_dimension_numbers<[1], [0], [0], [1], [0, 0, 1, 1], [], []>, precision = #tpu.contract_precision<fp32>} : vector<8x4xf32>, vector<4x32xf32>, vector<8x32xf32> -> vector<8x32xf32>
    %24 = arith.addf %18, %23 : vector<8x32xf32>
    %25 = vector.broadcast %5 : vector<1x32xf32> to vector<8x32xf32>
    %26 = arith.addf %24, %25 : vector<8x32xf32>
    %c0_32 = arith.constant 0 : index
    %c0_33 = arith.constant 0 : index
    %27 = vector.load %arg6[%c0_32, %c0_33] : memref<8x32xf32, #tpu.memory_space<vmem>>, vector<8x32xf32>
    tpu.vector_store %arg6[%c0_32, %c0_33], %26 {strides = array<i32>} : memref<8x32xf32, #tpu.memory_space<vmem>>, vector<8x32xf32>,
    %c0_34 = arith.constant 0 : index
    %c0_35 = arith.constant 0 : index
    %28 = tpu.strided_load %arg6[%c0_34, %c0_35] {strides = array<i32: 4, 1>} : memref<8x32xf32, #tpu.memory_space<vmem>>, vector<2x32xf32>
    %c0_36 = arith.constant 0 : index
    %c0_37 = arith.constant 0 : index
    %c0_38 = arith.constant 0 : index
    %29 = vector.load %arg4[%c0_36, %c0_37, %c0_38] : memref<1x2x128xf32, #tpu.memory_space<vmem>>, vector<1x2x32xf32>
    %30 = vector.shape_cast %29 : vector<1x2x32xf32> to vector<2x32xf32>
    %31 = vector.shape_cast %28 : vector<2x32xf32> to vector<1x2x32xf32>
    tpu.vector_store %arg4[%c0_36, %c0_37, %c0_38], %31 {strides = array<i32>} : memref<1x2x128xf32, #tpu.memory_space<vmem>>, vector<1x2x32xf32>,
    %c1_39 = arith.constant 1 : index
    %c0_40 = arith.constant 0 : index
    %32 = tpu.strided_load %arg6[%c1_39, %c0_40] {strides = array<i32: 4, 1>} : memref<8x32xf32, #tpu.memory_space<vmem>>, vector<2x32xf32>
    %c0_41 = arith.constant 0 : index
    %c0_42 = arith.constant 0 : index
    %c32 = arith.constant 32 : index
    %33 = vector.load %arg4[%c0_41, %c0_42, %c32] : memref<1x2x128xf32, #tpu.memory_space<vmem>>, vector<1x2x32xf32>
    %34 = vector.shape_cast %33 : vector<1x2x32xf32> to vector<2x32xf32>
    %35 = vector.shape_cast %32 : vector<2x32xf32> to vector<1x2x32xf32>
    tpu.vector_store %arg4[%c0_41, %c0_42, %c32], %35 {strides = array<i32>} : memref<1x2x128xf32, #tpu.memory_space<vmem>>, vector<1x2x32xf32>,
    %c2_43 = arith.constant 2 : index
    %c0_44 = arith.constant 0 : index
    %36 = tpu.strided_load %arg6[%c2_43, %c0_44] {strides = array<i32: 4, 1>} : memref<8x32xf32, #tpu.memory_space<vmem>>, vector<2x32xf32>
    %c0_45 = arith.constant 0 : index
    %c0_46 = arith.constant 0 : index
    %c64 = arith.constant 64 : index
    %37 = vector.load %arg4[%c0_45, %c0_46, %c64] : memref<1x2x128xf32, #tpu.memory_space<vmem>>, vector<1x2x32xf32>
    %38 = vector.shape_cast %37 : vector<1x2x32xf32> to vector<2x32xf32>
    %39 = vector.shape_cast %36 : vector<2x32xf32> to vector<1x2x32xf32>
    tpu.vector_store %arg4[%c0_45, %c0_46, %c64], %39 {strides = array<i32>} : memref<1x2x128xf32, #tpu.memory_space<vmem>>, vector<1x2x32xf32>,
    %c3 = arith.constant 3 : index
    %c0_47 = arith.constant 0 : index
    %40 = tpu.strided_load %arg6[%c3, %c0_47] {strides = array<i32: 4, 1>} : memref<8x32xf32, #tpu.memory_space<vmem>>, vector<2x32xf32>
    %c0_48 = arith.constant 0 : index
    %c0_49 = arith.constant 0 : index
    %c96 = arith.constant 96 : index
    %41 = vector.load %arg4[%c0_48, %c0_49, %c96] : memref<1x2x128xf32, #tpu.memory_space<vmem>>, vector<1x2x32xf32>
    %42 = vector.shape_cast %41 : vector<1x2x32xf32> to vector<2x32xf32>
    %43 = vector.shape_cast %40 : vector<2x32xf32> to vector<1x2x32xf32>
    tpu.vector_store %arg4[%c0_48, %c0_49, %c96], %43 {strides = array<i32>} : memref<1x2x128xf32, #tpu.memory_space<vmem>>, vector<1x2x32xf32>,
    return
  }
  func.func @transform_0(%arg0: i32) -> (i32, i32, i32) {
    %c0_i32 = arith.constant 0 : i32
    %c0_i32_0 = arith.constant 0 : i32
    %c0_i32_1 = arith.constant 0 : i32
    return %arg0, %c0_i32, %c0_i32_0 : i32, i32, i32
  }
  func.func @transform_1(%arg0: i32) -> (i32, i32, i32) {
    %c0_i32 = arith.constant 0 : i32
    %c0_i32_0 = arith.constant 0 : i32
    %c0_i32_1 = arith.constant 0 : i32
    %c0_i32_2 = arith.constant 0 : i32
    return %c0_i32, %c0_i32_0, %c0_i32_1 : i32, i32, i32
  }
  func.func @transform_2(%arg0: i32) -> (i32, i32) {
    %c0_i32 = arith.constant 0 : i32
    %c0_i32_0 = arith.constant 0 : i32
    %c0_i32_1 = arith.constant 0 : i32
    return %c0_i32, %c0_i32_0 : i32, i32
  }
  func.func @transform_3(%arg0: i32) -> (i32, i32, i32) {
    %c0_i32 = arith.constant 0 : i32
    %c0_i32_0 = arith.constant 0 : i32
    %c0_i32_1 = arith.constant 0 : i32
    return %arg0, %c0_i32, %c0_i32_0 : i32, i32, i32
  }
}

</mosaic_0001>

<bundles_post_ra>
// kernel: tpu_custom_call.1
= control target key start
LH: loop header
LB: loop body
LE: loop exit
PB: predicated region body
PF: predicated region fallthrough
CT: control target
= control target key end

     0   :  { %8 = vsyncpa [#allocation5], 0  ;;  %s2122_s0 = inlined_call_operand.vmem [shape: f32[2,8,4], index: 0, kind: input, shape index: {}]   ;;  %s2123_s1 = inlined_call_operand.vmem [shape: f32[3,4,32], index: 1, kind: input, shape index: {}]   ;;  %s2124_s2 = inlined_call_operand.vmem [shape: f32[1,32], index: 2, kind: input, shape index: {}]   ;;  %s2125_s3 = inlined_call_operand.hbm [shape: f32[2,2,128], index: 3, kind: output, shape index: {}]  }
   0x1   :  { %10 = vsyncpa [#allocation5 + $0x1], 0  ;;  %s1921_s12 = smov 0   ;;  %s1923_s13 = smov 0  }
   0x2   :  { %s1925_s14 = smov 0   ;;  %s1927_s15 = smov 0  }
   0x3 LB: > { %s1942_s16 = sadd.s32 4294967295, %s1893_s15   ;;  %s1648_s17 = sadd.s32 4294967294, %s1893_s15   ;;  %s1893_s15 = sphi %s1927_s15, %s2131_s15   ;;  %s1889_s14 = sphi %s1925_s14, %s2130_s14   ;;  %s1885_s13 = sphi %s1923_s13, %s2129_s13   ;;  %s1881_s12 = sphi %s1921_s12, %s2128_s12  }
   0x4   : > { %s1946_s18 = sadd.s32 1, %s1893_s15   ;;  %s91_s19 = sadd.s32 1, %s1889_s14 }
   0x5   : > { %s88_s20 = ssub.s32 %s1893_s15, %s1946_s18  ;;  %p101_p0 = scmp.ne.s32.totalorder %s1889_s14, %s1885_s13 }
   0x6   : > { %p89_p1 = scmp.eq.s32.totalorder %s88_s20, 0  ;;  %p102_p2 = scmp.eq.s32.totalorder %s1942_s16, 1 }
   0x7   : > { %p107_p3 = scmp.ne.s32.totalorder %s1885_s13, %s1881_s12  ;;  %p108_p4 = scmp.eq.s32.totalorder %s1648_s17, 1 }
   0x8   : > { %s1957_s21 = scalar_select %p89_p1, %s1889_s14, %s91_s19  }
   0x9   : > { %p1959_p5 = por %p102_p2, %p101_p0  ;;  %p1963_p6 = por %p108_p4, %p107_p3 }
   0xa   : > { %p1651_p7 = scmp.ge.s32.totalorder %s1893_s15, 1  ;;  %p139_p8 = scmp.lt.s32.totalorder %s1893_s15, 3 }
   0xc   : > { %p140_p9 = pnand %p1651_p7, %p139_p8 }
   0xd   : > { %v1654_v0 = vld [vmem:[%s2123_s1 + $0x4] sm:$0xf] (!%p140_p9)  ;;  %vm181_vm0 = vcmask (!%p140_p9), 1043456   ;;  %p162_p10 = scmp.lt.s32.totalorder (!%p140_p9), %s1942_s16, 1  ;;  %v1895_v1 = vmov (!%p140_p9), 0.0   ;;  %vm166_vm1 = vcmask (!%p140_p9), 24576  }
   0xe   : > { %143 = sbr.rel (%p140_p9) target bundleno = 439 (0x1b7), region = 32  ;;  %1697 = vmatprep.subr.mxu0 (!%p140_p9), %v1895_v1  ;;  %v183_v2 = vsel (!%p140_p9), %vm181_vm0, %v1654_v0, 0  ;;  %1702 = vmatprep.subr.mxu1 (!%p140_p9), %v1895_v1  ;;  %vm1896_vm2 = vmmov (!%p140_p9), 0   ;;  %v174_v4 = vld [vmem:[%s2123_s1] sm:$0xf] (!%p140_p9)  ;;  %vm170_vm3 = vcmask (!%p140_p9), 31744  }
   0xf   : > { %v186_v3 = vand.u32 (!%p140_p9), 4294901760, %v183_v2  ;;  %1699 = vmatprep.mubr.msk.f32.mxu0 (!%p140_p9), %vm1896_vm2, %v1895_v1  ;;  %1704 = vmatprep.mubr.msk.f32.mxu1 (!%p140_p9), %vm1896_vm2, %v1895_v1  ;;  %167 = vst.msk [vmem:[#allocation2] sm:$0x1] (!%p140_p9), %vm166_vm1, %v1895_v1  ;;  %168 = vst.msk [vmem:[#allocation2 + $0x9] sm:$0x1] (!%p140_p9), %vm166_vm1, %v1895_v1  ;;  %v635_v6 = vsel (!%p140_p9), %vm181_vm0, %v174_v4, 0 }
  0x10   : > { %v638_v10 = vand.u32 (!%p140_p9), 4294901760, %v635_v6  ;;  %v1655_v15 = vld [vmem:[%s2123_s1 + $0x8] sm:$0xf] (!%p140_p9)  ;;  %vm1546_vm4 = vcmask (!%p140_p9), 261120   ;;  %s159_s10 = sand.u32 (!%p140_p9), 1, %s1885_s13   ;;  %vm1549_vm5 = vcmask (!%p140_p9), 254976  }
  0x11   : > { %1698 = vmatpush3.msra.mxu0 (!%p140_p9), %v186_v3  ;;  %v263_v5 = vsub.f32 (!%p140_p9), %v183_v2, %v186_v3  ;;  %v1090_v20 = vsel (!%p140_p9), %vm181_vm0, %v1655_v15, 0  ;;  %s1652_s11 = sshll.u32 (!%p140_p9), %s159_s10, 1  ;;  %s1897_s17 = smov (!%p140_p9), 96   ;;  %vm1557_vm6 = vcmask (!%p140_p9), 517376   ;;  %vm1565_vm7 = vcmask (!%p140_p9), 779776  }
  0x12   : > { %1707 = vmatprep.subr.mxu0 (!%p140_p9), %v1895_v1  ;;  %v1992_v12 = vsub.f32 (!%p140_p9), %v635_v6, %v638_v10  ;;  %v2010_v25 = vand.u32 (!%p140_p9), 4294901760, %v1090_v20  ;;  %s1898_s19 = smov (!%p140_p9), 32   ;;  %s161_s20 = scalar_lea.vmem (!%p140_p9), [#allocation4], %s1652_s11  ;;  %vm1573_vm8 = vcmask (!%p140_p9), 1042176  }
  0x13   : > { %v264_v7 = vand.u32 (!%p140_p9), 4294901760, %v263_v5  ;;  %s1899_s24 = smov (!%p140_p9), 64   ;;  %s1658_s25 = sshll.u32 (!%p140_p9), %s1942_s16, 5 }
  0x14   : > { %v716_v19 = vand.u32 (!%p140_p9), 4294901760, %v1992_v12  ;;  %v2017_v30 = vsub.f32 (!%p140_p9), %v1090_v20, %v2010_v25  ;;  %s1576_s30 = scalar_lea.sflag (!%p140_p9), [#allocation5], %s159_s10 }
  0x15   : > { %s163_s26 = scalar_select %p162_p10, %s1942_s16, 1  ;;  %v265_v9 = vsub.f32 %v263_v5, %v264_v7 }
  0x16   : > { %v717_v24 = vsub.f32 %v1992_v12, %v716_v19  ;;  %v1171_v34 = vand.u32 4294901760, %v2017_v30  ;;  %s1900_s16 = smov [#allocation4]  }
  0x17   : > { %s1653_s29 = sshll.u32 %s163_s26, 3  ;;  %v266_v11 = vand.u32 4294901760, %v265_v9  ;;  %s1589_s26 = sshll.u32 %s161_s20, 4  ;;  %s2082_s26 = int_to_ptr.vmem [resolvable:$true] %s1589_s26 }
  0x18   : > { %s165_s5 = scalar_lea.vmem %s2122_s0, %s1653_s29  ;;  %v718_v29 = vand.u32 4294901760, %v717_v24  ;;  %v1172_v37 = vsub.f32 %v2017_v30, %v1171_v34  ;;  %s2080_s29 = scalar_lea.hbm %s2125_s3, %s1658_s25 }
  0x19   : > { %v169_v8 = vld [vmem:[%s165_s5] sm:$0xff]  ;;  %1703 = vmatpush3.msra.mxu1 %v266_v11  ;;  %s1831_s4 = scalar_lea.vmem %s2082_s26, 32  ;;  %s1835_s5 = sshll.u32 %s1900_s16, 4  ;;  %s1836_s5 = int_to_ptr.vmem [resolvable:$false] %s1835_s5 }
  0x1a   : > { %171 = vst.msk [vmem:[#allocation2 + $0x1] sm:$0xff] %vm170_vm3, %v169_v8  ;;  %1712 = vmatprep.subr.mxu1 %v1895_v1  ;;  %v1173_v40 = vand.u32 4294901760, %v1172_v37  ;;  %p1832_p11 = scmp.ne.s32.totalorder %s2082_s26, %s1831_s4  ;;  %s1837_s6 = scalar_lea.vmem %s1836_s5, 64 }
  0x1b   : > { %p1838_p0 = scmp.lt.s32.totalorder %s2082_s26, %s1836_s5  ;;  %p1839_p1 = scmp.lt.s32.totalorder %s1837_s6, %s1831_s4 }
  0x1c   : > { %p1833_p12 = pnand %p1832_p11, %p1959_p5 }
  0x1d   : > { %p1840_p2 = por %p1839_p1, %p1838_p0 }
  0x1e   : > { %p1834_p13 = pneg %p1833_p12 }
  0x20   : > { %p1841_p3 = pnand %p1840_p2, %p1834_p13 }
  0x21   : > { %v175_v13 = vld [vmem:[#allocation2 + $0x1] sm:$0xff] }
  0x22   : > { %v173_v14 = vld [vmem:[#allocation2] sm:$0xff]  ;;  %v179_v16 = vsel %vm170_vm3, %v175_v13, 0 }
  0x23   : > { %v632_v17 = vsel %vm170_vm3, %v173_v14, 0  ;;  %v251_v18 = vand.u32 4294901760, %v179_v16  ;;  %v1083_v31 = vld [vmem:[#allocation2 + $0x2] sm:$0xff] }
  0x24   : > { %v2002_v22 = vand.u32 4294901760, %v632_v17  ;;  %v1087_v33 = vsel %vm170_vm3, %v1083_v31, 0 }
  0x25   : > { %v252_v21 = vsub.f32 %v179_v16, %v251_v18  ;;  %1705 = vmatmul.mubr.f32.vlgmr.msra.gmra.mrb[0].mxu1 %v251_v18  ;;  %v1158_v36 = vand.u32 4294901760, %v1087_v33 }
  0x26   : > { %1713 = vmatpush3.msra.mxu1 %v186_v3  ;;  %1714 = vmatprep.mubr.msk.f32.mxu1 %vm1896_vm2, %v1895_v1  ;;  %v704_v27 = vsub.f32 %v632_v17, %v2002_v22 }
  0x27   : > { %v253_v23 = vand.u32 4294901760, %v252_v21  ;;  %1722 = vmatprep.subr.mxu1 %v1895_v1  ;;  %v1159_v39 = vsub.f32 %v1087_v33, %v1158_v36 }
  0x28   : > { %v705_v32 = vand.u32 4294901760, %v704_v27 }
  0x29   : > { %v254_v26 = vsub.f32 %v252_v21, %v253_v23  ;;  %1715 = vmatmul.mubr.f32.vlgmr.msra.gmra.mrb[2].mxu1 %v253_v23  ;;  %v1160_v41 = vand.u32 4294901760, %v1159_v39 }
  0x2a   : > { %1723 = vmatpush3.msra.mxu1 %v186_v3  ;;  %1724 = vmatprep.mubr.msk.f32.mxu1 %vm1896_vm2, %v1895_v1  ;;  %v706_v35 = vsub.f32 %v704_v27, %v705_v32 }
  0x2b   : > { %v255_v28 = vand.u32 4294901760, %v254_v26  ;;  %1732 = vmatprep.subr.mxu1 %v1895_v1  ;;  %v1161_v42 = vsub.f32 %v1159_v39, %v1160_v41 }
  0x2c   : > { %v707_v38 = vand.u32 4294901760, %v706_v35 }
  0x2d   : > { %1700 = vmatmul.mubr.f32.vlgmr.msra.gmra.mrb[0].mxu0 %v255_v28  ;;  %1725 = vmatmul.mubr.f32.vlgmr.msra.gmra.mrb[4].mxu1 %v251_v18  ;;  %v1162_v43 = vand.u32 4294901760, %v1161_v42 }
  0x2e   : > { %1708 = vmatpush3.msra.mxu0 %v263_v5  ;;  %1709 = vmatprep.mubr.msk.f32.mxu0 %vm1896_vm2, %v1895_v1 }
  0x2f   : > { %1717 = vmatprep.subr.mxu0 %v1895_v1  ;;  %1733 = vmatpush3.msra.mxu1 %v718_v29 }
  0x30   : > { %1734 = vmatprep.mubr.msk.f32.mxu1 %vm1896_vm2, %v1895_v1  ;;  %1742 = vmatprep.subr.mxu1 %v1895_v1 }
  0x31   : > { %1710 = vmatmul.mubr.f32.vlgmr.msra.gmra.mrb[2].mxu0 %v252_v21  ;;  %1735 = vmatmul.mubr.f32.vlgmr.msra.gmra.mrb[6].mxu1 %v2002_v22 }
  0x32   : > { %1718 = vmatpush3.msra.mxu0 %v264_v7  ;;  %1719 = vmatprep.mubr.msk.f32.mxu0 %vm1896_vm2, %v1895_v1 }
  0x33   : > { %1727 = vmatprep.subr.mxu0 %v1895_v1  ;;  %1743 = vmatpush3.msra.mxu1 %v638_v10 }
  0x34   : > { %1744 = vmatprep.mubr.msk.f32.mxu1 %vm1896_vm2, %v1895_v1  ;;  %1752 = vmatprep.subr.mxu1 %v1895_v1 }
  0x35   : > { %1720 = vmatmul.mubr.f32.vlgmr.msra.gmra.mrb[4].mxu0 %v251_v18  ;;  %1745 = vmatmul.mubr.f32.vlgmr.msra.gmra.mrb[8].mxu1 %v705_v32  ;;  %v1656_v32 = vld [vmem:[%s2124_s2] ss:$0 sm:$0xff] }
  0x36   : > { %1728 = vmatpush3.msra.mxu0 %v638_v10  ;;  %1729 = vmatprep.mubr.msk.f32.mxu0 %vm1896_vm2, %v1895_v1 }
  0x37   : > { %1737 = vmatprep.subr.mxu0 %v1895_v1  ;;  %1753 = vmatpush3.msra.mxu1 %v638_v10 }
  0x38   : > { %1754 = vmatprep.mubr.msk.f32.mxu1 %vm1896_vm2, %v1895_v1  ;;  %1762 = vmatprep.subr.mxu1 %v1895_v1 }
  0x39   : > { %1730 = vmatmul.mubr.f32.vlgmr.msra.gmra.mrb[6].mxu0 %v707_v38  ;;  %1755 = vmatmul.mubr.f32.vlgmr.msra.gmra.mrb[10].mxu1 %v2002_v22 }
  0x3a   : > { %1738 = vmatpush3.msra.mxu0 %v1992_v12  ;;  %1739 = vmatprep.mubr.msk.f32.mxu0 %vm1896_vm2, %v1895_v1 }
  0x3b   : > { %1747 = vmatprep.subr.mxu0 %v1895_v1  ;;  %1763 = vmatpush3.msra.mxu1 %v1173_v40 }
  0x3c   : > { %1764 = vmatprep.mubr.msk.f32.mxu1 %vm1896_vm2, %v1895_v1  ;;  %1772 = vmatprep.subr.mxu1 %v1895_v1 }
  0x3d   : > { %1740 = vmatmul.mubr.f32.vlgmr.msra.gmra.mrb[8].mxu0 %v704_v27  ;;  %1765 = vmatmul.mubr.f32.vlgmr.msra.gmra.mrb[12].mxu1 %v1158_v36 }
  0x3e   : > { %1748 = vmatpush3.msra.mxu0 %v716_v19  ;;  %1749 = vmatprep.mubr.msk.f32.mxu0 %vm1896_vm2, %v1895_v1 }
  0x3f   : > { %1757 = vmatprep.subr.mxu0 %v1895_v1  ;;  %1773 = vmatpush3.msra.mxu1 %v2010_v25 }
  0x40   : > { %1774 = vmatprep.mubr.msk.f32.mxu1 %vm1896_vm2, %v1895_v1  ;;  %1782 = vmatprep.subr.mxu1 %v1895_v1 }
  0x41   : > { %1750 = vmatmul.mubr.f32.vlgmr.msra.gmra.mrb[10].mxu0 %v2002_v22  ;;  %1775 = vmatmul.mubr.f32.vlgmr.msra.gmra.mrb[14].mxu1 %v1160_v41 }
  0x42   : > { %1758 = vmatpush3.msra.mxu0 %v2010_v25  ;;  %1759 = vmatprep.mubr.msk.f32.mxu0 %vm1896_vm2, %v1895_v1 }
  0x43   : > { %1767 = vmatprep.subr.mxu0 %v1895_v1  ;;  %1783 = vmatpush3.msra.mxu1 %v2010_v25 }
  0x44   : > { %1784 = vmatprep.mubr.msk.f32.mxu1 %vm1896_vm2, %v1895_v1 }
  0x45   : > { %1760 = vmatmul.mubr.f32.vlgmr.msra.gmra.mrb[12].mxu0 %v1162_v43  ;;  %1785 = vmatmul.mubr.f32.vlgmr.msra.gmra.mrb[16].mxu1 %v1158_v36 }
  0x46   : > { %1768 = vmatpush3.msra.mxu0 %v2017_v30  ;;  %1769 = vmatprep.mubr.msk.f32.mxu0 %vm1896_vm2, %v1895_v1 }
  0x47   : > { %1777 = vmatprep.subr.mxu0 %v1895_v1 }
  0x49   : > { %1770 = vmatmul.mubr.f32.vlgmr.msra.gmra.mrb[14].mxu0 %v1159_v39 }
  0x4a   : > { %1778 = vmatpush3.msra.mxu0 %v1171_v34  ;;  %1779 = vmatprep.mubr.msk.f32.mxu0 %vm1896_vm2, %v1895_v1 }
  0x4d   : > { %1780 = vmatmul.mubr.f32.vlgmr.msra.gmra.mrb[16].mxu0 %v1158_v36 }
  0xf8   : > { %v333_v44 = vpop.f32.mrb[0].mxu1 }
  0xf9   : > { %v1706_v45 = vpop.f32.mrb[1].mxu1 }
  0xfc   : > { %v481_v46 = vpop.f32.mrb[2].mxu1 }
  0xfd   : > { %v1716_v47 = vpop.f32.mrb[3].mxu1 }
 0x100   : > { %v257_v48 = vpop.f32.mrb[0].mxu0  ;;  %v627_v49 = vpop.f32.mrb[4].mxu1 }
 0x101   : > { %v334_v50 = vadd.f32 %v333_v44, %v257_v48  ;;  %v1701_v51 = vpop.f32.mrb[1].mxu0  ;;  %v1726_v52 = vpop.f32.mrb[5].mxu1 }
 0x104   : > { %v407_v53 = vpop.f32.mrb[2].mxu0  ;;  %v785_v54 = vpop.f32.mrb[6].mxu1 }
 0x105   : > { %v408_v55 = vadd.f32 %v407_v53, %v334_v50  ;;  %v1711_v56 = vpop.f32.mrb[3].mxu0  ;;  %v1736_v57 = vpop.f32.mrb[7].mxu1 }
 0x107   : > { %v482_v58 = vadd.f32 %v481_v46, %v408_v55 }
 0x108   : > { %v555_v59 = vpop.f32.mrb[4].mxu0  ;;  %v933_v60 = vpop.f32.mrb[8].mxu1 }
 0x109   : > { %v556_v61 = vadd.f32 %v555_v59, %v482_v58  ;;  %v1721_v62 = vpop.f32.mrb[5].mxu0  ;;  %v1746_v63 = vpop.f32.mrb[9].mxu1 }
 0x10b   : > { %v628_v0 = vadd.f32 %v627_v49, %v556_v61 }
 0x10c   : > { %v709_v1 = vpop.f32.mrb[6].mxu0  ;;  %v1079_v2 = vpop.f32.mrb[10].mxu1 }
 0x10d   : > { %v710_v3 = vadd.f32 %v709_v1, %v628_v0  ;;  %v1731_v4 = vpop.f32.mrb[7].mxu0  ;;  %v1756_v5 = vpop.f32.mrb[11].mxu1 }
 0x10f   : > { %v786_v6 = vadd.f32 %v785_v54, %v710_v3 }
 0x110   : > { %v859_v7 = vpop.f32.mrb[8].mxu0  ;;  %v1240_v8 = vpop.f32.mrb[12].mxu1 }
 0x111   : > { %v860_v9 = vadd.f32 %v859_v7, %v786_v6  ;;  %v1741_v10 = vpop.f32.mrb[9].mxu0  ;;  %v1766_v11 = vpop.f32.mrb[13].mxu1 }
 0x113   : > { %v934_v12 = vadd.f32 %v933_v60, %v860_v9 }
 0x114   : > { %v1007_v13 = vpop.f32.mrb[10].mxu0  ;;  %v1388_v14 = vpop.f32.mrb[14].mxu1 }
 0x115   : > { %v1008_v15 = vadd.f32 %v1007_v13, %v934_v12  ;;  %v1751_v16 = vpop.f32.mrb[11].mxu0  ;;  %v1776_v17 = vpop.f32.mrb[15].mxu1 }
 0x117   : > { %v1080_v18 = vadd.f32 %v1079_v2, %v1008_v15 }
 0x118   : > { %v1164_v19 = vpop.f32.mrb[12].mxu0  ;;  %v1534_v20 = vpop.f32.mrb[16].mxu1 }
 0x119   : > { %v1241_v21 = vadd.f32 %v1240_v8, %v1164_v19  ;;  %v1761_v22 = vpop.f32.mrb[13].mxu0  ;;  %v1786_v23 = vpop.f32.mrb[17].mxu1 }
 0x11c   : > { %v1314_v24 = vpop.f32.mrb[14].mxu0 }
 0x11d   : > { %v1315_v25 = vadd.f32 %v1314_v24, %v1241_v21  ;;  %v1771_v26 = vpop.f32.mrb[15].mxu0 }
 0x11f   : > { %v1389_v27 = vadd.f32 %v1388_v14, %v1315_v25 }
 0x120   : > { %v1462_v28 = vpop.f32.mrb[16].mxu0 }
 0x121   : > { %v1463_v29 = vadd.f32 %v1462_v28, %v1389_v27  ;;  %v1781_v30 = vpop.f32.mrb[17].mxu0 }
 0x123   : > { %v1535_v31 = vadd.f32 %v1534_v20, %v1463_v29 }
 0x125   : > { %v1538_v33 = vadd.f32 %v1535_v31, %v1080_v18 }
 0x127   : > { %v1545_v34 = vadd.f32 %v1656_v32, %v1538_v33 }
 0x129   : > { %1547 = vst.msk [vmem:[#allocation3] sm:$0xff] %vm1546_vm4, %v1545_v34 }
 0x130   : > { %v1568_v35 = vld [vmem:[#allocation3 + $0x3] ss:$4 sm:$0x3]  ;;  %v1552_v36 = vld [vmem:[#allocation3 + $0x1] ss:$4 sm:$0x3] }
 0x131   : > { %1570 = vrot.lane.b32.xlu1 %v1568_v35, %s1897_s17  ;;  %1554 = vrot.lane.b32.xlu0 %v1552_v36, %s1898_s19  ;;  %v1548_v37 = vld [vmem:[#allocation3] ss:$4 sm:$0x3]  ;;  %v1560_v38 = vld [vmem:[#allocation3 + $0x2] ss:$4 sm:$0x3] }
 0x132   : > { %1550 = vst.msk [vmem:[%s161_s20] sm:$0x3] %vm1549_vm5, %v1548_v37 }
 0x135   : > { %1562 = vrot.lane.b32.xlu0 %v1560_v38, %s1899_s24 }
 0x1a3   : > { %v1555_v39 = vpop.permute.xlu0 %1554  ;;  %v1571_v41 = vpop.permute.xlu1 %1570 }
 0x1a4   : > { %1558 = vst.msk [vmem:[%s161_s20] sm:$0x3] %vm1557_vm6, %v1555_v39 }
 0x1a7   : > { %v1563_v40 = vpop.permute.xlu0 %1562 }
 0x1a8   : > { %1566 = vst.msk [vmem:[%s161_s20] sm:$0x3] %vm1565_vm7, %v1563_v40 }
 0x1a9   : > { %1574 = vst.msk [vmem:[%s161_s20] sm:$0x3] %vm1573_vm8, %v1571_v41 }
 0x1aa   : > { %1844 = shalt.err (!%p1841_p3)
}
 0x1ab   : > { %s1845_s7 = scalar_lea.hbm %s2080_s29, 32  ;;  %s1849_s10 = scalar_lea.hbm %s2125_s3, 64 }
 0x1ac   : > { %p1846_p4 = scmp.ne.s32.totalorder %s2080_s29, %s1845_s7  ;;  %p1850_p9 = scmp.lt.u32.totalorder %s2080_s29, %s2125_s3 }
 0x1ad   : > { %p1851_p10 = scmp.lt.u32.totalorder %s1849_s10, %s1845_s7  ;;  %p1853_p12 = scmp.lt.u32.totalorder %s1845_s7, %s2080_s29 }
 0x1ae   : > { %p1847_p7 = pnand %p1846_p4, %p1959_p5 }
 0x1af   : > { %p1852_p11 = por %p1851_p10, %p1850_p9 }
 0x1b0   : > { %p1848_p8 = pneg %p1847_p7 }
 0x1b1   : > { %p1854_p13 = por %p1853_p12, %p1852_p11 }
 0x1b3   : > { %p1855_p0 = pnand %p1854_p13, %p1848_p8 }
 0x1b5   : > { %1858 = shalt.err (!%p1855_p0)
}
 0x1b6   : > { %1787 = dma.vmem_to_hbm [thread:$0]  (%p1959_p5), %s2082_s26, 32, %s2080_s29, %s1576_s30  }
 0x1b7 PF: > { %p1793_p1 = scmp.ge.s32.totalorder %s1893_s15, 2  ;;  %s1601_s19 = sand.u32 1, %s1881_s12  }
 0x1b8   : > { %s1602_s20 = scalar_lea.sflag [#allocation5], %s1601_s19 }
 0x1b9   : > { %p1790_p2 = pnand %p1793_p1, %p1963_p6 }
 0x1bb   : > { %1876 = dma.done.wait (!%p1790_p2), %s1602_s20, 32  }
 0x1bc   : > { %1878 = vsyncadd (!%p1790_p2), %s1602_s20, 4294967264  ;;  %p13_p3 = scmp.ge.s32.totalorder %s1946_s18, 4   ;;  %s2128_s12 = smov %s1885_s13 }
 0x1bd   : > { %s2129_s13 = smov %s1889_s14  ;;  %s2130_s14 = smov %s1957_s21 }
 0x1be   : > { %s2131_s15 = smov %s1946_s18  ;;  %15 = sbr.rel (!%p13_p3) target bundleno = 3 (0x3), region = 72 }
 0x1c5   :  { %1607 = vsyncpa [#allocation5], 1 }
 0x1c6   :  { %1609 = vsyncpa [#allocation5 + $0x1], 1 }

</bundles_post_ra>
